<compile_context>
chip_gen: v5e
topology: v5e:2x2
jax: 0.10.0
libtpu: 0.0.40
codegen_flags: <defaults>
</compile_context>

<pallas_src>
import functools

import jax
import jax.numpy as jnp
from jax import lax
from jax.experimental import pallas as pl
from jax.experimental.pallas import tpu as pltpu

LANES = 128
SUBLANES = 8


def _dice_partial_kernel(p_ref, t_ref, out_ref,
                         acc_st_ref, acc_s_ref, acc_t_ref, *,
                         n_valid, tile_rows, steps_per_core):
    """Accumulate sum(s*t), sum(s), sum(t) with s = tanh(0.5*p) for one core.

    Grid: (num_cores, steps_per_core); axis 0 is "parallel" (TC split on v7x),
    axis 1 is the "arbitrary" reduction axis.  Per-core partials are written
    once, at the last reduction step, to an SMEM (num_cores, 3) output.
    """
    c = pl.program_id(0)
    i = pl.program_id(1)

    @pl.when(i == 0)
    def _init():
        acc_st_ref[...] = jnp.zeros_like(acc_st_ref)
        acc_s_ref[...] = jnp.zeros_like(acc_s_ref)
        acc_t_ref[...] = jnp.zeros_like(acc_t_ref)

    # First row (of the lane-dense 2D view) this step is *supposed* to cover.
    # int32 is fine for any realistic n (< ~2.7e11 elements).
    row0 = (c * steps_per_core + i) * tile_rows
    full_rows = n_valid // LANES      # rows that are entirely valid
    rem_lanes = n_valid % LANES       # valid lanes in row `full_rows` (if any)
    needs_mask = row0 + tile_rows > full_rows

    def _accumulate(p32, t32):
        s = jnp.tanh(0.5 * p32)       # sigmoid(p) = 0.5*(s + 1); EUP transcendental
        st = s * t32
        # Single-vreg accumulators: reduce the block over its leading axis
        # (pure VALU adds across vregs, no XLU) and add into (8,128).
        acc_st_ref[...] += jnp.sum(st.reshape(-1, SUBLANES, LANES), axis=0)
        acc_s_ref[...] += jnp.sum(s.reshape(-1, SUBLANES, LANES), axis=0)
        acc_t_ref[...] += jnp.sum(t32.reshape(-1, SUBLANES, LANES), axis=0)

    # Fast path: fully valid block (the overwhelmingly common case).
    @pl.when(jnp.logical_not(needs_mask))
    def _fast():
        _accumulate(p_ref[...].astype(jnp.float32),
                    t_ref[...].astype(jnp.float32))

    # Ragged / out-of-range / partial-edge block: mask invalid elements to 0.
    # tanh(0) = 0, so masked elements contribute exactly zero to all sums.
    @pl.when(needs_mask)
    def _ragged():
        row_ids = row0 + lax.broadcasted_iota(jnp.int32, (tile_rows, LANES), 0)
        valid = row_ids < full_rows
        if rem_lanes:
            lane_ids = lax.broadcasted_iota(jnp.int32, (tile_rows, LANES), 1)
            valid = valid | ((row_ids == full_rows) & (lane_ids < rem_lanes))
        p32 = jnp.where(valid, p_ref[...].astype(jnp.float32), 0.0)
        t32 = jnp.where(valid, t_ref[...].astype(jnp.float32), 0.0)
        _accumulate(p32, t32)

    @pl.when(i == pl.num_programs(1) - 1)
    def _finalize():
        out_ref[0, 0] = jnp.sum(acc_st_ref[...])   # sum tanh(p/2) * t
        out_ref[0, 1] = jnp.sum(acc_s_ref[...])    # sum tanh(p/2)
        out_ref[0, 2] = jnp.sum(acc_t_ref[...])    # sum t


def _chip_defaults():
    """(tile_rows, num_cores) tuned per TPU generation."""
    kind = ""
    try:
        kind = jax.devices()[0].device_kind.lower()
    except Exception:
        pass
    if "v7" in kind:
        # 4 MiB f32 input blocks; 2 inputs x 2 buffers ~16 MiB fits 64 MiB VMEM.
        return 8192, 2
    if "v6" in kind:
        return 8192, 1
    if "v5" in kind and ("lite" in kind or "5e" in kind):
        return 4096, 1
    return 4096, 1


def dice_loss(predicted, target, smooth=1.0, tile_rows=None, num_cores=None):
    """Pallas implementation of DiceScore.forward(predicted, target)."""
    assert predicted.shape == target.shape
    n = predicted.size
    assert n > 0

    default_tile_rows, default_num_cores = _chip_defaults()
    if tile_rows is None:
        tile_rows = default_tile_rows
    if num_cores is None:
        num_cores = default_num_cores

    # Native dtype all the way into the kernel (cast happens in-register).
    p_flat = jnp.ravel(predicted)
    t_flat = jnp.ravel(target)

    # Pad only to a multiple of 128 lanes.  The (8,128) divisibility rule
    # applies to the BlockSpec, not the array, and the in-kernel mask handles
    # partial edge blocks, so padding to 1024 is unnecessary.  The pad copy
    # only materializes when n % 128 != 0 (rare for image tensors).
    pad = (-n) % LANES
    rows = (n + pad) // LANES
    if rows < SUBLANES:                      # tiny input: need >= one (8,128) block
        pad += (SUBLANES - rows) * LANES
        rows = SUBLANES
    if pad:
        p_flat = jnp.pad(p_flat, (0, pad))
        t_flat = jnp.pad(t_flat, (0, pad))

    p2d = p_flat.reshape(rows, LANES)
    t2d = t_flat.reshape(rows, LANES)

    tile_rows = max(SUBLANES, (min(tile_rows, rows) // SUBLANES) * SUBLANES)
    blocks_total = pl.cdiv(rows, tile_rows)

    # Split the row range across TensorCores only where there is more than one
    # (v7x).  Clamped index_map + in-kernel mask handle any uneven split.
    num_cores = max(1, min(num_cores, blocks_total))
    steps_per_core = pl.cdiv(blocks_total, num_cores)

    def in_index_map(c, i):
        return (jnp.minimum(c * steps_per_core + i, blocks_total - 1), 0)

    kernel = functools.partial(
        _dice_partial_kernel,
        n_valid=n, tile_rows=tile_rows, steps_per_core=steps_per_core)

    # 2 inputs x 2 pipeline buffers + single-vreg accumulators + slack.
    block_bytes = tile_rows * LANES * (p2d.dtype.itemsize + t2d.dtype.itemsize)
    vmem_limit = max(2 * block_bytes + (4 << 20), 32 << 20)

    cost = pl.CostEstimate(
        flops=5 * n,
        transcendentals=n,
        bytes_accessed=n * (p2d.dtype.itemsize + t2d.dtype.itemsize) + 16)

    # TODO(synk): on v7x, if profiling shows only one TensorCore busy, switch
    # axis 0 to pltpu.CORE_PARALLEL (string "parallel" may not shard); and if
    # DMA is exposed with bf16 inputs, sweep pipeline_mode=pl.Buffered(3).
    partials = pl.pallas_call(
        kernel,
        out_shape=jax.ShapeDtypeStruct((num_cores, 3), jnp.float32),
        grid_spec=pltpu.PrefetchScalarGridSpec(
            num_scalar_prefetch=0,
            grid=(num_cores, steps_per_core),
            in_specs=[
                pl.BlockSpec((tile_rows, LANES), in_index_map),
                pl.BlockSpec((tile_rows, LANES), in_index_map),
            ],
            out_specs=pl.BlockSpec(
                (1, 3), lambda c, i: (c, 0), memory_space=pltpu.SMEM),
            scratch_shapes=[
                pltpu.VMEM((SUBLANES, LANES), jnp.float32),  # acc: tanh(p/2)*t
                pltpu.VMEM((SUBLANES, LANES), jnp.float32),  # acc: tanh(p/2)
                pltpu.VMEM((SUBLANES, LANES), jnp.float32),  # acc: t
            ],
        ),
        compiler_params=pltpu.CompilerParams(
            dimension_semantics=("parallel", "arbitrary"),
            vmem_limit_bytes=int(vmem_limit),
        ),
        cost_estimate=cost,
    )(p2d, t2d)

    sum_st = jnp.sum(partials[:, 0])
    sum_s = jnp.sum(partials[:, 1])
    sum_t = jnp.sum(partials[:, 2])

    # sigmoid(p) = 0.5*(tanh(p/2) + 1):
    intersection = 0.5 * (sum_st + sum_t)          # Σ sigmoid(p) * t
    sum_sigmoid = 0.5 * sum_s + 0.5 * n            # Σ sigmoid(p)  (exact count n)
    union = sum_sigmoid + sum_t + smooth
    return 1.0 - (2.0 * intersection + smooth) / union


def dice_loss_ref(predicted, target, smooth=1.0):
    p = jax.nn.sigmoid(predicted.astype(jnp.float32))
    t = target.astype(jnp.float32)
    intersection = jnp.sum(p * t)
    union = jnp.sum(p) + jnp.sum(t) + smooth
    return 1.0 - (2.0 * intersection + smooth) / union


if __name__ == "__main__":
    key = jax.random.PRNGKey(0)

    # Cases exercising: aligned single-block fast path, ragged tail with a
    # partial edge block (rows not divisible by 8), sub-128-element input,
    # and the multi-step / forced 2-core split with a clamped duplicate block.
    cases = [
        ((2, 4, 16, 16), None, None),   # n = 2048: aligned, fast path only
        ((2, 3, 21, 17), None, None),   # n = 2142: ragged tail, partial edge block
        ((3, 5, 7), None, None),        # n = 105: sub-128 tail, rows<8 fallback
        ((2, 4, 64, 40), 32, 2),        # n = 20480, tiny tiles, 2 cores x 3 steps
    ]
    for idx, (shape, tr, nc) in enumerate(cases):
        k1, k2 = jax.random.split(jax.random.fold_in(key, idx))
        predicted = jax.random.normal(k1, shape, dtype=jnp.float32)
        target = (jax.random.uniform(k2, shape) > 0.5).astype(jnp.float32)

        loss = jax.block_until_ready(
            dice_loss(predicted, target, smooth=1.0, tile_rows=tr, num_cores=nc))
        ref = dice_loss_ref(predicted, target, smooth=1.0)
        assert jnp.allclose(loss, ref, atol=5e-5, rtol=5e-5), (shape, loss, ref)

    print("KERNEL_OK")
</pallas_src>

<mosaic_0001>
module attributes {stable_mosaic.version = 11 : i64} {
  func.func @_dice_partial_kernel(%arg0: i32, %arg1: i32, %arg2: memref<16x128xf32, #tpu.memory_space<vmem>>, %arg3: memref<16x128xf32, #tpu.memory_space<vmem>>, %arg4: memref<1x3xf32, #tpu.memory_space<smem>>, %arg5: memref<8x128xf32, #tpu.memory_space<vmem>>, %arg6: memref<8x128xf32, #tpu.memory_space<vmem>>, %arg7: memref<8x128xf32, #tpu.memory_space<vmem>>) attributes {dimension_semantics = [#tpu.dimension_semantics<parallel>, #tpu.dimension_semantics<arbitrary>], iteration_bounds = array<i64: 1, 1>, scalar_prefetch = 0 : i64, scratch_operands = 3 : i64, tpu.core_type = #tpu.core_type<tc>, window_params = [{transform_indices = @transform_0, window_bounds = array<i64: 16, 128>}, {transform_indices = @transform_1, window_bounds = array<i64: 16, 128>}, {transform_indices = @transform_2, window_bounds = array<i64: 1, 3>}]} {
    %c0_i32 = arith.constant 0 : i32
    %0 = arith.cmpi eq, %arg1, %c0_i32 : i32
    %1 = arith.extui %0 : i1 to i32
    %c0_i32_0 = arith.constant 0 : i32
    %2 = arith.cmpi ne, %1, %c0_i32_0 : i32
    scf.if %2 {
      %cst = arith.constant 0.000000e+00 : f32
      %16 = vector.broadcast %cst : f32 to vector<8x128xf32>
      %c0 = arith.constant 0 : index
      %c0_7 = arith.constant 0 : index
      %17 = vector.load %arg5[%c0, %c0_7] : memref<8x128xf32, #tpu.memory_space<vmem>>, vector<8x128xf32>
      tpu.vector_store %arg5[%c0, %c0_7], %16 {strides = array<i32>} : memref<8x128xf32, #tpu.memory_space<vmem>>, vector<8x128xf32>,
      %cst_8 = arith.constant 0.000000e+00 : f32
      %18 = vector.broadcast %cst_8 : f32 to vector<8x128xf32>
      %c0_9 = arith.constant 0 : index
      %c0_10 = arith.constant 0 : index
      %19 = vector.load %arg6[%c0_9, %c0_10] : memref<8x128xf32, #tpu.memory_space<vmem>>, vector<8x128xf32>
      tpu.vector_store %arg6[%c0_9, %c0_10], %18 {strides = array<i32>} : memref<8x128xf32, #tpu.memory_space<vmem>>, vector<8x128xf32>,
      %cst_11 = arith.constant 0.000000e+00 : f32
      %20 = vector.broadcast %cst_11 : f32 to vector<8x128xf32>
      %c0_12 = arith.constant 0 : index
      %c0_13 = arith.constant 0 : index
      %21 = vector.load %arg7[%c0_12, %c0_13] : memref<8x128xf32, #tpu.memory_space<vmem>>, vector<8x128xf32>
      tpu.vector_store %arg7[%c0_12, %c0_13], %20 {strides = array<i32>} : memref<8x128xf32, #tpu.memory_space<vmem>>, vector<8x128xf32>,
    } else {
    }
    %c1_i32 = arith.constant 1 : i32
    %3 = arith.muli %arg0, %c1_i32 : i32
    %4 = arith.addi %3, %arg1 : i32
    %c16_i32 = arith.constant 16 : i32
    %5 = arith.muli %4, %c16_i32 : i32
    %c16_i32_1 = arith.constant 16 : i32
    %6 = arith.addi %5, %c16_i32_1 : i32
    %c16_i32_2 = arith.constant 16 : i32
    %7 = arith.cmpi sgt, %6, %c16_i32_2 : i32
    %true = arith.constant true
    %8 = arith.xori %7, %true : i1
    %9 = arith.extui %8 : i1 to i32
    %c0_i32_3 = arith.constant 0 : i32
    %10 = arith.cmpi ne, %9, %c0_i32_3 : i32
    scf.if %10 {
      %c0 = arith.constant 0 : index
      %c0_7 = arith.constant 0 : index
      %16 = vector.load %arg2[%c0, %c0_7] : memref<16x128xf32, #tpu.memory_space<vmem>>, vector<16x128xf32>
      %c0_8 = arith.constant 0 : index
      %c0_9 = arith.constant 0 : index
      %17 = vector.load %arg3[%c0_8, %c0_9] : memref<16x128xf32, #tpu.memory_space<vmem>>, vector<16x128xf32>
      %cst = arith.constant 5.000000e-01 : f32
      %18 = vector.broadcast %cst : f32 to vector<16x128xf32>
      %19 = arith.mulf %18, %16 : vector<16x128xf32>
      %20 = math.tanh %19 : vector<16x128xf32>
      %21 = arith.mulf %20, %17 : vector<16x128xf32>
      %c0_10 = arith.constant 0 : index
      %c0_11 = arith.constant 0 : index
      %22 = vector.load %arg5[%c0_10, %c0_11] : memref<8x128xf32, #tpu.memory_space<vmem>>, vector<8x128xf32>
      %23 = vector.shape_cast %21 : vector<16x128xf32> to vector<2x8x128xf32>
      %cst_12 = arith.constant dense<0.000000e+00> : vector<8x128xf32>
      %24 = vector.multi_reduction <add>, %23, %cst_12 [0] : vector<2x8x128xf32> to vector<8x128xf32>
      %25 = arith.addf %22, %24 : vector<8x128xf32>
      %c0_13 = arith.constant 0 : index
      %c0_14 = arith.constant 0 : index
      %26 = vector.load %arg5[%c0_13, %c0_14] : memref<8x128xf32, #tpu.memory_space<vmem>>, vector<8x128xf32>
      tpu.vector_store %arg5[%c0_13, %c0_14], %25 {strides = array<i32>} : memref<8x128xf32, #tpu.memory_space<vmem>>, vector<8x128xf32>,
      %c0_15 = arith.constant 0 : index
      %c0_16 = arith.constant 0 : index
      %27 = vector.load %arg6[%c0_15, %c0_16] : memref<8x128xf32, #tpu.memory_space<vmem>>, vector<8x128xf32>
      %28 = vector.shape_cast %20 : vector<16x128xf32> to vector<2x8x128xf32>
      %cst_17 = arith.constant dense<0.000000e+00> : vector<8x128xf32>
      %29 = vector.multi_reduction <add>, %28, %cst_17 [0] : vector<2x8x128xf32> to vector<8x128xf32>
      %30 = arith.addf %27, %29 : vector<8x128xf32>
      %c0_18 = arith.constant 0 : index
      %c0_19 = arith.constant 0 : index
      %31 = vector.load %arg6[%c0_18, %c0_19] : memref<8x128xf32, #tpu.memory_space<vmem>>, vector<8x128xf32>
      tpu.vector_store %arg6[%c0_18, %c0_19], %30 {strides = array<i32>} : memref<8x128xf32, #tpu.memory_space<vmem>>, vector<8x128xf32>,
      %c0_20 = arith.constant 0 : index
      %c0_21 = arith.constant 0 : index
      %32 = vector.load %arg7[%c0_20, %c0_21] : memref<8x128xf32, #tpu.memory_space<vmem>>, vector<8x128xf32>
      %33 = vector.shape_cast %17 : vector<16x128xf32> to vector<2x8x128xf32>
      %cst_22 = arith.constant dense<0.000000e+00> : vector<8x128xf32>
      %34 = vector.multi_reduction <add>, %33, %cst_22 [0] : vector<2x8x128xf32> to vector<8x128xf32>
      %35 = arith.addf %32, %34 : vector<8x128xf32>
      %c0_23 = arith.constant 0 : index
      %c0_24 = arith.constant 0 : index
      %36 = vector.load %arg7[%c0_23, %c0_24] : memref<8x128xf32, #tpu.memory_space<vmem>>, vector<8x128xf32>
      tpu.vector_store %arg7[%c0_23, %c0_24], %35 {strides = array<i32>} : memref<8x128xf32, #tpu.memory_space<vmem>>, vector<8x128xf32>,
    } else {
    }
    %11 = arith.extui %7 : i1 to i32
    %c0_i32_4 = arith.constant 0 : i32
    %12 = arith.cmpi ne, %11, %c0_i32_4 : i32
    scf.if %12 {
      %16 = tpu.iota {dimensions = array<i32: 0>} : vector<16x128xi32>
      %17 = vector.broadcast %5 : i32 to vector<16x128xi32>
      %18 = arith.addi %17, %16 : vector<16x128xi32>
      %c16_i32_7 = arith.constant 16 : i32
      %19 = vector.broadcast %c16_i32_7 : i32 to vector<16x128xi32>
      %20 = arith.cmpi slt, %18, %19 : vector<16x128xi32>
      %c0 = arith.constant 0 : index
      %c0_8 = arith.constant 0 : index
      %21 = vector.load %arg2[%c0, %c0_8] : memref<16x128xf32, #tpu.memory_space<vmem>>, vector<16x128xf32>
      %cst = arith.constant 0.000000e+00 : f32
      %22 = vector.broadcast %cst : f32 to vector<16x128xf32>
      %23 = arith.select %20, %21, %22 : vector<16x128xi1>, vector<16x128xf32>
      %c0_9 = arith.constant 0 : index
      %c0_10 = arith.constant 0 : index
      %24 = vector.load %arg3[%c0_9, %c0_10] : memref<16x128xf32, #tpu.memory_space<vmem>>, vector<16x128xf32>
      %cst_11 = arith.constant 0.000000e+00 : f32
      %25 = vector.broadcast %cst_11 : f32 to vector<16x128xf32>
      %26 = arith.select %20, %24, %25 : vector<16x128xi1>, vector<16x128xf32>
      %cst_12 = arith.constant 5.000000e-01 : f32
      %27 = vector.broadcast %cst_12 : f32 to vector<16x128xf32>
      %28 = arith.mulf %27, %23 : vector<16x128xf32>
      %29 = math.tanh %28 : vector<16x128xf32>
      %30 = arith.mulf %29, %26 : vector<16x128xf32>
      %c0_13 = arith.constant 0 : index
      %c0_14 = arith.constant 0 : index
      %31 = vector.load %arg5[%c0_13, %c0_14] : memref<8x128xf32, #tpu.memory_space<vmem>>, vector<8x128xf32>
      %32 = vector.shape_cast %30 : vector<16x128xf32> to vector<2x8x128xf32>
      %cst_15 = arith.constant dense<0.000000e+00> : vector<8x128xf32>
      %33 = vector.multi_reduction <add>, %32, %cst_15 [0] : vector<2x8x128xf32> to vector<8x128xf32>
      %34 = arith.addf %31, %33 : vector<8x128xf32>
      %c0_16 = arith.constant 0 : index
      %c0_17 = arith.constant 0 : index
      %35 = vector.load %arg5[%c0_16, %c0_17] : memref<8x128xf32, #tpu.memory_space<vmem>>, vector<8x128xf32>
      tpu.vector_store %arg5[%c0_16, %c0_17], %34 {strides = array<i32>} : memref<8x128xf32, #tpu.memory_space<vmem>>, vector<8x128xf32>,
      %c0_18 = arith.constant 0 : index
      %c0_19 = arith.constant 0 : index
      %36 = vector.load %arg6[%c0_18, %c0_19] : memref<8x128xf32, #tpu.memory_space<vmem>>, vector<8x128xf32>
      %37 = vector.shape_cast %29 : vector<16x128xf32> to vector<2x8x128xf32>
      %cst_20 = arith.constant dense<0.000000e+00> : vector<8x128xf32>
      %38 = vector.multi_reduction <add>, %37, %cst_20 [0] : vector<2x8x128xf32> to vector<8x128xf32>
      %39 = arith.addf %36, %38 : vector<8x128xf32>
      %c0_21 = arith.constant 0 : index
      %c0_22 = arith.constant 0 : index
      %40 = vector.load %arg6[%c0_21, %c0_22] : memref<8x128xf32, #tpu.memory_space<vmem>>, vector<8x128xf32>
      tpu.vector_store %arg6[%c0_21, %c0_22], %39 {strides = array<i32>} : memref<8x128xf32, #tpu.memory_space<vmem>>, vector<8x128xf32>,
      %c0_23 = arith.constant 0 : index
      %c0_24 = arith.constant 0 : index
      %41 = vector.load %arg7[%c0_23, %c0_24] : memref<8x128xf32, #tpu.memory_space<vmem>>, vector<8x128xf32>
      %42 = vector.shape_cast %26 : vector<16x128xf32> to vector<2x8x128xf32>
      %cst_25 = arith.constant dense<0.000000e+00> : vector<8x128xf32>
      %43 = vector.multi_reduction <add>, %42, %cst_25 [0] : vector<2x8x128xf32> to vector<8x128xf32>
      %44 = arith.addf %41, %43 : vector<8x128xf32>
      %c0_26 = arith.constant 0 : index
      %c0_27 = arith.constant 0 : index
      %45 = vector.load %arg7[%c0_26, %c0_27] : memref<8x128xf32, #tpu.memory_space<vmem>>, vector<8x128xf32>
      tpu.vector_store %arg7[%c0_26, %c0_27], %44 {strides = array<i32>} : memref<8x128xf32, #tpu.memory_space<vmem>>, vector<8x128xf32>,
    } else {
    }
    %c0_i32_5 = arith.constant 0 : i32
    %13 = arith.cmpi eq, %arg1, %c0_i32_5 : i32
    %14 = arith.extui %13 : i1 to i32
    %c0_i32_6 = arith.constant 0 : i32
    %15 = arith.cmpi ne, %14, %c0_i32_6 : i32
    scf.if %15 {
      %c0 = arith.constant 0 : index
      %c0_7 = arith.constant 0 : index
      %16 = vector.load %arg5[%c0, %c0_7] : memref<8x128xf32, #tpu.memory_space<vmem>>, vector<8x128xf32>
      %17 = vector.shape_cast %16 : vector<8x128xf32> to vector<1x8x128xf32>
      %cst = arith.constant dense<0.000000e+00> : vector<1xf32>
      %18 = vector.multi_reduction <add>, %17, %cst [1, 2] : vector<1x8x128xf32> to vector<1xf32>
      %19 = vector.shape_cast %18 : vector<1xf32> to vector<1x1x1xf32>
      %20 = vector.extract %19[0, 0, 0] : f32 from vector<1x1x1xf32>
      %c0_8 = arith.constant 0 : index
      %c0_9 = arith.constant 0 : index
      %21 = memref.load %arg4[%c0_8, %c0_9] : memref<1x3xf32, #tpu.memory_space<smem>>
      memref.store %20, %arg4[%c0_8, %c0_9] : memref<1x3xf32, #tpu.memory_space<smem>>
      %c0_10 = arith.constant 0 : index
      %c0_11 = arith.constant 0 : index
      %22 = vector.load %arg6[%c0_10, %c0_11] : memref<8x128xf32, #tpu.memory_space<vmem>>, vector<8x128xf32>
      %23 = vector.shape_cast %22 : vector<8x128xf32> to vector<1x8x128xf32>
      %cst_12 = arith.constant dense<0.000000e+00> : vector<1xf32>
      %24 = vector.multi_reduction <add>, %23, %cst_12 [1, 2] : vector<1x8x128xf32> to vector<1xf32>
      %25 = vector.shape_cast %24 : vector<1xf32> to vector<1x1x1xf32>
      %26 = vector.extract %25[0, 0, 0] : f32 from vector<1x1x1xf32>
      %c0_13 = arith.constant 0 : index
      %c1 = arith.constant 1 : index
      %27 = memref.load %arg4[%c0_13, %c1] : memref<1x3xf32, #tpu.memory_space<smem>>
      memref.store %26, %arg4[%c0_13, %c1] : memref<1x3xf32, #tpu.memory_space<smem>>
      %c0_14 = arith.constant 0 : index
      %c0_15 = arith.constant 0 : index
      %28 = vector.load %arg7[%c0_14, %c0_15] : memref<8x128xf32, #tpu.memory_space<vmem>>, vector<8x128xf32>
      %29 = vector.shape_cast %28 : vector<8x128xf32> to vector<1x8x128xf32>
      %cst_16 = arith.constant dense<0.000000e+00> : vector<1xf32>
      %30 = vector.multi_reduction <add>, %29, %cst_16 [1, 2] : vector<1x8x128xf32> to vector<1xf32>
      %31 = vector.shape_cast %30 : vector<1xf32> to vector<1x1x1xf32>
      %32 = vector.extract %31[0, 0, 0] : f32 from vector<1x1x1xf32>
      %c0_17 = arith.constant 0 : index
      %c2 = arith.constant 2 : index
      %33 = memref.load %arg4[%c0_17, %c2] : memref<1x3xf32, #tpu.memory_space<smem>>
      memref.store %32, %arg4[%c0_17, %c2] : memref<1x3xf32, #tpu.memory_space<smem>>
    } else {
    }
    return
  }
  func.func @transform_0(%arg0: i32, %arg1: i32) -> (i32, i32) {
    %c1_i32 = arith.constant 1 : i32
    %0 = arith.muli %arg0, %c1_i32 : i32
    %1 = arith.addi %0, %arg1 : i32
    %c0_i32 = arith.constant 0 : i32
    %2 = arith.minsi %1, %c0_i32 : i32
    %c0_i32_0 = arith.constant 0 : i32
    %c0_i32_1 = arith.constant 0 : i32
    return %2, %c0_i32_0 : i32, i32
  }
  func.func @transform_1(%arg0: i32, %arg1: i32) -> (i32, i32) {
    %c1_i32 = arith.constant 1 : i32
    %0 = arith.muli %arg0, %c1_i32 : i32
    %1 = arith.addi %0, %arg1 : i32
    %c0_i32 = arith.constant 0 : i32
    %2 = arith.minsi %1, %c0_i32 : i32
    %c0_i32_0 = arith.constant 0 : i32
    %c0_i32_1 = arith.constant 0 : i32
    return %2, %c0_i32_0 : i32, i32
  }
  func.func @transform_2(%arg0: i32, %arg1: i32) -> (i32, i32) {
    %c0_i32 = arith.constant 0 : i32
    %c0_i32_0 = arith.constant 0 : i32
    return %arg0, %c0_i32 : i32, i32
  }
}

</mosaic_0001>

<bundles_post_ra>
// kernel: tpu_custom_call.1
= control target key start
LH: loop header
LB: loop body
LE: loop exit
PB: predicated region body
PF: predicated region fallthrough
CT: control target
= control target key end

     0   :  { %7 = vsyncpa [#allocation6], 0  ;;  %s308_s0 = inlined_call_operand.hbm [shape: f32[16,128], index: 0, kind: input, shape index: {}]   ;;  %s309_s1 = inlined_call_operand.hbm [shape: f32[16,128], index: 1, kind: input, shape index: {}]   ;;  %s310_s2 = inlined_call_operand.hbm [shape: f32[1,3], index: 2, kind: output, shape index: {}]  }
   0x1   :  { %8 = vsyncpa [#allocation9], 0 }
   0x2   :  { %9 = vsyncpa [#allocation7], 0  ;;  %s20_s11 = sshll.u32 %s308_s0, 4  ;;  %s279_s12 = smov [#allocation5]   ;;  %s21_s11 = int_to_ptr.hbm [resolvable:$true] %s20_s11 }
   0x3   :  { %s22_s13 = sshll.u32 %s279_s12, 4  ;;  %s39_s16 = sshll.u32 %s309_s1, 4  ;;  %s23_s13 = int_to_ptr.vmem [resolvable:$true] %s22_s13  ;;  %s40_s16 = int_to_ptr.hbm [resolvable:$true] %s39_s16 }
   0x4   :  { %s280_s17 = smov 128   ;;  %s281_s18 = smov 8  }
   0x5   :  { %28 = dma.hbm_to_vmem [thread:$0]  %s21_s11, 256, %s23_s13, [#allocation6], %s280_s17, %s280_s17, %s281_s18  }
   0x6   :  { %s282_s19 = smov [#allocation8]  }
   0x7   :  { %s41_s20 = sshll.u32 %s282_s19, 4  ;;  %s42_s20 = int_to_ptr.vmem [resolvable:$true] %s41_s20 }
   0x8   :  { %47 = dma.hbm_to_vmem [thread:$0]  %s40_s16, 256, %s42_s20, [#allocation9], %s280_s17, %s280_s17, %s281_s18  }
   0x9   :  { %273 = dma.done.wait [#allocation6], 256  }
   0xa   :  { %274 = vsyncadd [#allocation6], 4294967040 }
   0xb   :  { %275 = dma.done.wait [#allocation9], 256  }
   0xc   :  { %276 = vsyncadd [#allocation9], 4294967040  ;;  %v79_v0 = vld [vmem:[#allocation5] sm:$0xff]  ;;  %v80_v1 = vld [vmem:[#allocation5 + $0x8] sm:$0xff]  ;;  %s182_s22 = sshll.u32 %s310_s2, 4  ;;  %s283_s25 = smov [#allocation10]   ;;  %s183_s22 = int_to_ptr.hbm [resolvable:$true] %s182_s22 }
   0xd   :  { %v81_v2 = vld [vmem:[#allocation8] sm:$0xff]  ;;  %v82_v3 = vld [vmem:[#allocation8 + $0x8] sm:$0xff]  ;;  %v83_v4 = vmul.f32 0.5, %v79_v0  ;;  %v84_v5 = vmul.f32 0.5, %v80_v1 }
   0xe   :  { %v98_v6 = vadd.f32 %v82_v3, %v81_v2 }
   0xf   :  { %209 = vtanh.f32 %v83_v4 }
  0x10   :  { %211 = vtanh.f32 %v84_v5  ;;  %166 = vadd.xlane.f32.xlu1 %v98_v6 }
  0x15   :  { %v210_v7 = vpop.eup %209 }
  0x16   :  { %v212_v8 = vpop.eup %211  ;;  %v87_v9 = vmul.f32 %v210_v7, %v81_v2 }
  0x17   :  { %v88_v10 = vmul.f32 %v212_v8, %v82_v3  ;;  %v94_v12 = vadd.f32 %v212_v8, %v210_v7 }
  0x19   :  { %v90_v11 = vadd.f32 %v88_v10, %v87_v9 }
  0x1b   :  { %142 = vadd.xlane.f32.xlu0 %v90_v11 }
  0x23   :  { %154 = vadd.xlane.f32.xlu0 %v94_v12 }
  0x83   :  { %v167_v13 = vpop.xlane.xlu1 %166 }
  0x84   :  { %v168_v15 = vrot.slane %v167_v13, 4 }
  0x86   :  { %v169_v18 = vadd.f32 %v168_v15, %v167_v13 }
  0x88   :  { %v170_v21 = vrot.slane %v169_v18, 2 }
  0x8a   :  { %v171_v27 = vadd.f32 %v170_v21, %v169_v18 }
  0x8c   :  { %v172_v30 = vrot.slane %v171_v27, 1 }
  0x8e   :  { %v143_v14 = vpop.xlane.xlu0 %142  ;;  %v173_v33 = vadd.f32 %v172_v30, %v171_v27 }
  0x8f   :  { %v144_v16 = vrot.slane %v143_v14, 4 }
  0x91   :  { %v145_v17 = vadd.f32 %v144_v16, %v143_v14 }
  0x93   :  { %v146_v19 = vrot.slane %v145_v17, 2 }
  0x95   :  { %v147_v20 = vadd.f32 %v146_v19, %v145_v17 }
  0x96   :  { %v155_v22 = vpop.xlane.xlu0 %154 }
  0x97   :  { %v156_v23 = vrot.slane %v155_v22, 4  ;;  %v148_v24 = vrot.slane %v147_v20, 1 }
  0x99   :  { %v157_v25 = vadd.f32 %v156_v23, %v155_v22  ;;  %v149_v26 = vadd.f32 %v148_v24, %v147_v20 }
  0x9b   :  { %v158_v28 = vrot.slane %v157_v25, 2  ;;  %198 = vpush %v149_v26 }
  0x9d   :  { %v159_v29 = vadd.f32 %v158_v28, %v157_v25 }
  0x9f   :  { %v160_v31 = vrot.slane %v159_v29, 1 }
  0xa1   :  { %v161_v32 = vadd.f32 %v160_v31, %v159_v29 }
  0xa3   :  { %200 = vpush %v161_v32 }
  0xa4   :  { %202 = vpush %v173_v33 }
  0xcc   :  { %s199_s0 = spop %198 }
  0xcd   :  { %152 = sst [smem:[#allocation10]] %s199_s0 }
  0xd4   :  { %s201_s23 = spop %200 }
  0xd5   :  { %164 = sst [smem:[#allocation10 + $0x1]] %s201_s23  ;;  %s203_s24 = spop %202 }
  0xd6   :  { %176 = sst [smem:[#allocation10 + $0x2]] %s203_s24 }
  0xd7   :  { %185 = dma.smem_to_hbm %s283_s25, 16, %s183_s22, [#allocation7]  }
  0xd8   :  { %277 = dma.done.wait [#allocation7], 16  }
  0xd9   :  { %278 = vsyncadd [#allocation7], 4294967280 }
  0xda   :  { %190 = sfence }
  0xdb   :  { %191 = vsyncpa [#allocation6], 1 }
  0xdc   :  { %192 = vsyncpa [#allocation9], 1 }
  0xdd   :  { %193 = vsyncpa [#allocation7], 1 }

</bundles_post_ra>
